<compile_context>
chip_gen: v5e
topology: v5e:2x2
jax: 0.10.0
libtpu: 0.0.40
codegen_flags: <defaults>
</compile_context>

<pallas_src>
import functools
import math

import numpy as np
import jax
import jax.numpy as jnp
from jax.experimental import pallas as pl
from jax.experimental.pallas import tpu as pltpu


def make_positional_encoding(d_model: int, max_seq_len: int = 80) -> jnp.ndarray:
    """Reproduces the PyTorch __init__ loop (same asymmetric cos exponent).

    The (i + 1 < d_model) guard only protects against the out-of-bounds write
    the PyTorch original would do for odd d_model; for even d_model (as in the
    reference module) the table is bit-identical in construction.
    """
    pe = np.zeros((max_seq_len, d_model), dtype=np.float32)
    for pos in range(max_seq_len):
        for i in range(0, d_model, 2):
            pe[pos, i] = math.sin(pos / 10000 ** (2 * i / d_model))
            if i + 1 < d_model:
                pe[pos, i + 1] = math.cos(pos / 10000 ** (2 * (i + 1) / d_model))
    return jnp.asarray(pe)  # (max_seq_len, d_model)


def _pos_enc_kernel(x_ref, pe_ref, o_ref, *, scale):
    # x_ref: (rows_per_tile, S*D) tile of the flattened activations.
    # pe_ref: (1, S*D) shared positional-encoding row, broadcast over rows.
    # Pure VPU elementwise work; the kernel is HBM-bandwidth bound.
    o_ref[...] = x_ref[...] * scale + pe_ref[...]


def positional_encoder(x: jnp.ndarray, pe: jnp.ndarray, d_model: int) -> jnp.ndarray:
    """x: (B, S, D) float32; pe: (max_seq_len, D) float32."""
    B, S, D = x.shape
    assert D == d_model
    assert S <= pe.shape[0]
    scale = float(math.sqrt(d_model))

    # Lane-dense 2-D view: one row per batch element, S*D contiguous lanes.
    row = S * D
    x2 = x.reshape(B, row)
    pe2 = pe[:S, :].reshape(1, row)  # shared across all rows (glue slicing/reshape)

    # Tile sizing: biggest row-tile that keeps each buffer around ~2 MiB so the
    # double-buffered x/out tiles (plus pe) stay well inside every generation's
    # scoped-VMEM budget (v5e default 16 MiB, v6e/v7x 32 MiB).
    bytes_per_row = row * x2.dtype.itemsize
    target_tile_bytes = 2 * 1024 * 1024
    rows_per_tile = max(1, min(B, target_tile_bytes // max(1, bytes_per_row)))
    if rows_per_tile < B:
        # Partial-extent blocks must keep the sublane dim a multiple of 8.
        rows_per_tile = min(B, max(8, (rows_per_tile // 8) * 8))
    grid_rows = pl.cdiv(B, rows_per_tile)

    kernel = functools.partial(_pos_enc_kernel, scale=scale)

    out2 = pl.pallas_call(
        kernel,
        out_shape=jax.ShapeDtypeStruct((B, row), x2.dtype),
        grid=(grid_rows,),
        in_specs=[
            pl.BlockSpec((rows_per_tile, row), lambda r: (r, 0)),  # x row tile
            pl.BlockSpec((1, row), lambda r: (0, 0)),              # pe, constant index
        ],
        out_specs=pl.BlockSpec((rows_per_tile, row), lambda r: (r, 0)),
        compiler_params=pltpu.CompilerParams(
            dimension_semantics=("parallel",),        # lets v7x split rows across 2 TCs
            vmem_limit_bytes=32 * 1024 * 1024,        # headroom on v5e's 16 MiB default
        ),
    )(x2, pe2)

    return out2.reshape(B, S, D)


if __name__ == "__main__":
    d_model = 32
    max_seq_len = 80
    batch = 2
    seq = 8

    key = jax.random.PRNGKey(0)
    x = jax.random.normal(key, (batch, seq, d_model), dtype=jnp.float32)

    pe = make_positional_encoding(d_model, max_seq_len)

    out = positional_encoder(x, pe, d_model)
    out = jax.block_until_ready(out)

    # Reference check in plain JAX (same semantics as the PyTorch forward).
    ref = x * math.sqrt(d_model) + pe[None, :seq, :]
    np.testing.assert_allclose(np.asarray(out), np.asarray(ref), rtol=1e-6, atol=1e-6)

    print("KERNEL_OK")
</pallas_src>

<mosaic_0001>
module attributes {stable_mosaic.version = 11 : i64} {
  func.func @_pos_enc_kernel(%arg0: i32, %arg1: memref<2x256xf32, #tpu.memory_space<vmem>>, %arg2: memref<1x256xf32, #tpu.memory_space<vmem>>, %arg3: memref<2x256xf32, #tpu.memory_space<vmem>>) attributes {dimension_semantics = [#tpu.dimension_semantics<parallel>], iteration_bounds = array<i64: 1>, scalar_prefetch = 0 : i64, scratch_operands = 0 : i64, tpu.core_type = #tpu.core_type<tc>, window_params = [{transform_indices = @transform_0, window_bounds = array<i64: 2, 256>}, {pipeline_mode = #tpu.pipeline_mode<synchronous>, transform_indices = @transform_1, window_bounds = array<i64: 1, 256>}, {transform_indices = @transform_2, window_bounds = array<i64: 2, 256>}]} {
    %c0 = arith.constant 0 : index
    %c0_0 = arith.constant 0 : index
    %0 = vector.load %arg1[%c0, %c0_0] : memref<2x256xf32, #tpu.memory_space<vmem>>, vector<2x256xf32>
    %cst = arith.constant 5.65685415 : f32
    %1 = vector.broadcast %cst : f32 to vector<2x256xf32>
    %2 = arith.mulf %0, %1 : vector<2x256xf32>
    %c0_1 = arith.constant 0 : index
    %c0_2 = arith.constant 0 : index
    %3 = vector.load %arg2[%c0_1, %c0_2] : memref<1x256xf32, #tpu.memory_space<vmem>>, vector<1x256xf32>
    %4 = vector.broadcast %3 : vector<1x256xf32> to vector<2x256xf32>
    %5 = arith.addf %2, %4 : vector<2x256xf32>
    %c0_3 = arith.constant 0 : index
    %c0_4 = arith.constant 0 : index
    %6 = vector.load %arg3[%c0_3, %c0_4] : memref<2x256xf32, #tpu.memory_space<vmem>>, vector<2x256xf32>
    tpu.vector_store %arg3[%c0_3, %c0_4], %5 {strides = array<i32>} : memref<2x256xf32, #tpu.memory_space<vmem>>, vector<2x256xf32>,
    return
  }
  func.func @transform_0(%arg0: i32) -> (i32, i32) {
    %c0_i32 = arith.constant 0 : i32
    %c0_i32_0 = arith.constant 0 : i32
    return %arg0, %c0_i32 : i32, i32
  }
  func.func @transform_1(%arg0: i32) -> (i32, i32) {
    %c0_i32 = arith.constant 0 : i32
    %c0_i32_0 = arith.constant 0 : i32
    %c0_i32_1 = arith.constant 0 : i32
    return %c0_i32, %c0_i32_0 : i32, i32
  }
  func.func @transform_2(%arg0: i32) -> (i32, i32) {
    %c0_i32 = arith.constant 0 : i32
    %c0_i32_0 = arith.constant 0 : i32
    return %arg0, %c0_i32 : i32, i32
  }
}

</mosaic_0001>

<bundles_post_ra>
// kernel: tpu_custom_call.1
= control target key start
LH: loop header
LB: loop body
LE: loop exit
PB: predicated region body
PF: predicated region fallthrough
CT: control target
= control target key end

     0   :  { %7 = vsyncpa [#allocation3], 0  ;;  %s178_s0 = inlined_call_operand.hbm [shape: f32[2,256], index: 0, kind: input, shape index: {}]   ;;  %s179_s1 = inlined_call_operand.hbm [shape: f32[1,256], index: 1, kind: input, shape index: {}]   ;;  %s180_s2 = inlined_call_operand.hbm [shape: f32[2,256], index: 2, kind: output, shape index: {}]  }
   0x1   :  { %8 = vsyncpa [#allocation6], 0 }
   0x2   :  { %9 = vsyncpa [#allocation4], 0  ;;  %s15_s11 = sshll.u32 %s178_s0, 4  ;;  %s151_s12 = smov [#allocation2]   ;;  %s16_s11 = int_to_ptr.hbm [resolvable:$true] %s15_s11 }
   0x3   :  { %s17_s13 = sshll.u32 %s151_s12, 4  ;;  %s26_s16 = sshll.u32 %s179_s1, 4  ;;  %s18_s13 = int_to_ptr.vmem [resolvable:$true] %s17_s13  ;;  %s27_s16 = int_to_ptr.hbm [resolvable:$true] %s26_s16 }
   0x4   :  { %20 = dma.hbm_to_vmem [thread:$0]  %s16_s11, 64, %s18_s13, [#allocation3]  }
   0x5   :  { %s152_s17 = smov [#allocation5]  }
   0x6   :  { %s28_s18 = sshll.u32 %s152_s17, 4  ;;  %s29_s18 = int_to_ptr.vmem [resolvable:$true] %s28_s18 }
   0x7   :  { %31 = dma.hbm_to_vmem [thread:$0]  %s27_s16, 32, %s29_s18, [#allocation6]  }
   0x8   :  { %145 = dma.done.wait [#allocation3], 64  }
   0x9   :  { %146 = vsyncadd [#allocation3], 4294967232 }
   0xa   :  { %147 = dma.done.wait [#allocation6], 32  }
   0xb   :  { %148 = vsyncadd [#allocation6], 4294967264  ;;  %v40_v0 = vld [vmem:[#allocation2] sm:$0xf]  ;;  %v42_v1 = vld [vmem:[#allocation5] sm:$0x3] }
   0xc   :  { %v44_v2 = vperm.slane %v42_v1, 0  ;;  %v45_v3 = vperm.slane %v42_v1, 1  ;;  %v41_v4 = vmul.f32 5.656854, %v40_v0  ;;  %vm47_vm0 = vcmask 1041408   ;;  %s153_s0 = smov [#allocation7]  }
   0xd   :  { %s57_s19 = sshll.u32 %s153_s0, 4  ;;  %s59_s21 = sshll.u32 %s180_s2, 4  ;;  %s58_s19 = int_to_ptr.vmem [resolvable:$true] %s57_s19  ;;  %s60_s21 = int_to_ptr.hbm [resolvable:$true] %s59_s21 }
   0xe   :  { %v46_v5 = vrot.slane %v45_v3, 6 }
  0x10   :  { %v48_v6 = vsel %vm47_vm0, %v44_v2, %v46_v5 }
  0x11   :  { %v50_v7 = vadd.f32 %v48_v6, %v41_v4 }
  0x13   :  { %51 = vst [vmem:[#allocation7] sm:$0xf] %v50_v7 }
  0x14   :  { %62 = dma.vmem_to_hbm [thread:$0]  %s58_s19, 64, %s60_s21, [#allocation4]  }
  0x15   :  { %149 = dma.done.wait [#allocation4], 64  }
  0x16   :  { %150 = vsyncadd [#allocation4], 4294967232 }
  0x17   :  { %67 = vsyncpa [#allocation3], 1 }
  0x18   :  { %68 = vsyncpa [#allocation6], 1 }
  0x19   :  { %69 = vsyncpa [#allocation4], 1 }

</bundles_post_ra>
